<compile_context>
chip_gen: v5e
topology: v5e:2x2
jax: 0.10.0
libtpu: 0.0.40
codegen_flags: <defaults>
</compile_context>

<pallas_src>
import math
import numpy as np
import jax
import jax.numpy as jnp
from jax.experimental import pallas as pl
from jax.experimental.pallas import tpu as pltpu


# ----------------------------------------------------------------------------
# Host-side parameter construction (mirrors the PyTorch __init__)
# ----------------------------------------------------------------------------
def get_freq_indices(method):
    assert method in ['top1', 'top2', 'top4', 'top8', 'top16', 'top32',
                      'bot1', 'bot2', 'bot4', 'bot8', 'bot16', 'bot32',
                      'low1', 'low2', 'low4', 'low8', 'low16', 'low32']
    num_freq = int(method[3:])
    if 'top' in method:
        all_x = [0, 0, 6, 0, 0, 1, 1, 4, 5, 1, 3, 0, 0, 0, 3, 2, 4, 6, 3, 5, 5, 2, 6, 5, 5, 3, 3, 4, 2, 2, 6, 1]
        all_y = [0, 1, 0, 5, 2, 0, 2, 0, 0, 6, 0, 4, 6, 3, 5, 2, 6, 3, 3, 3, 5, 1, 1, 2, 4, 2, 1, 1, 3, 0, 5, 3]
    elif 'low' in method:
        all_x = [0, 0, 1, 1, 0, 2, 2, 1, 2, 0, 3, 4, 0, 1, 3, 0, 1, 2, 3, 4, 5, 0, 1, 2, 3, 4, 5, 6, 1, 2, 3, 4]
        all_y = [0, 1, 0, 1, 2, 0, 1, 2, 2, 3, 0, 0, 4, 3, 1, 5, 4, 3, 2, 1, 0, 6, 5, 4, 3, 2, 1, 0, 6, 5, 4, 3]
    else:  # bot
        all_x = [6, 1, 3, 3, 2, 4, 1, 2, 4, 4, 5, 1, 4, 6, 2, 5, 6, 1, 6, 2, 2, 4, 3, 3, 5, 5, 6, 2, 5, 5, 3, 6]
        all_y = [6, 4, 4, 6, 6, 3, 1, 4, 4, 5, 6, 5, 2, 2, 5, 1, 4, 3, 5, 0, 3, 1, 1, 2, 4, 2, 1, 1, 5, 3, 3, 3]
    return all_x[:num_freq], all_y[:num_freq]


def build_dct_filter(tile_size_x, mapper_x, channel):
    # Matches MultiSpectralDCTLayer.get_dct_filter: (channel, dct_h); the
    # original code only uses mapper_x / the height axis.
    assert channel % len(mapper_x) == 0, "channel must be divisible by num_freq"
    dct_filter = np.zeros((channel, tile_size_x), dtype=np.float32)
    c_part = channel // len(mapper_x)
    for i, u_x in enumerate(mapper_x):
        for t_x in range(tile_size_x):
            val = math.cos(math.pi * u_x * (t_x + 0.5) / tile_size_x) / math.sqrt(tile_size_x)
            if u_x != 0:
                val *= math.sqrt(2)
            dct_filter[i * c_part:(i + 1) * c_part, t_x] = val
    return dct_filter  # np.float32 (C, dct_h)


def adaptive_pool_matrix(out_size, in_size):
    """(out_size, in_size) mixing matrix of torch adaptive_avg_pool1d."""
    P = np.zeros((out_size, in_size), dtype=np.float32)
    for i in range(out_size):
        start = (i * in_size) // out_size
        end = -(-((i + 1) * in_size) // out_size)  # ceil
        P[i, start:end] = 1.0 / (end - start)
    return P


def build_fused_weight(dct_weight, H, W, dct_h, dct_w):
    """Fold adaptive_avg_pool2d((dct_h,dct_w)) + mean-over-W + DCT-over-H into
    a single (C, H*W) weight:  y[c] = sum_{h,w} x[c,h,w] * w_full[c, h*W+w].
    The fold is algebraically exact."""
    Ph = adaptive_pool_matrix(dct_h, H)          # (dct_h, H)
    Pw = adaptive_pool_matrix(dct_w, W)          # (dct_w, W)
    A = np.asarray(dct_weight, np.float32) @ Ph  # (C, H)
    b = Pw.sum(axis=0) / float(dct_w)            # (W,)
    w_full = A[:, :, None] * b[None, None, :]    # (C, H, W)
    return jnp.asarray(w_full.reshape(A.shape[0], H * W))  # (C, H*W) f32


# ----------------------------------------------------------------------------
# Pallas kernel: TB batch samples per grid step, lane-dense (C, HW_pad) blocks
# ----------------------------------------------------------------------------
def msa_kernel(x_ref, wfull_ref, w1_ref, w2_ref, o_ref):
    # Fused pooling + DCT reduction: one VPU multiply + one lane-axis reduce,
    # accumulated in f32 regardless of the storage dtype.
    y = jnp.sum(x_ref[...].astype(jnp.float32) * wfull_ref[...][None, :, :],
                axis=-1)                                                   # (TB, C)
    # Tiny squeeze-excitation MLP (bias-free): Linear -> ReLU -> Linear -> Sigmoid.
    # FLOPs are negligible; keep on MXU (not on the HBM roofline).
    z1 = jnp.maximum(
        jnp.dot(y, w1_ref[...], preferred_element_type=jnp.float32), 0.0)  # (TB, C//r)
    z2 = jnp.dot(z1, w2_ref[...], preferred_element_type=jnp.float32)      # (TB, C)
    scale = 1.0 / (1.0 + jnp.exp(-z2))                                     # (TB, C) f32
    # Channel-wise rescale in the storage dtype: no block-sized f32 temp is
    # kept alive (less vst traffic, less VMEM -> bigger batch tiles).
    o_ref[...] = (x_ref[...] * scale[:, :, None].astype(x_ref.dtype)).astype(o_ref.dtype)


# ----------------------------------------------------------------------------
# Generation-aware tiling helpers
# ----------------------------------------------------------------------------
def _vmem_capacity_bytes():
    try:
        info = pltpu.get_tpu_info()
        return int(getattr(info, "vmem_capacity_bytes", 64 << 20))
    except Exception:
        return 64 << 20  # conservative (v7x per-TC figure)


def _pick_batch_tile(n, c, hw_pad, elem, vmem_limit, two_cores):
    """Largest TB whose pipeline footprint fits the VMEM budget:
         2x in block (double buffered) + 2x out block (double buffered)
         + one f32 block-sized transient for the multiply feeding the reduce,
         + resident weights.
       On 2-TensorCore parts keep grid >= 2 so the 'parallel' batch axis can be
       sharded across both cores."""
    per_sample = c * hw_pad * (2 * elem + 2 * elem + 4)
    weight_bytes = 2 * c * hw_pad * 4 + 4 * c * c        # fused weight (dbl-buf) + FC weights
    budget = max(per_sample, int(vmem_limit * 0.8) - weight_bytes)
    tb_max = max(1, budget // per_sample)
    if two_cores and n >= 2:
        tb_max = min(tb_max, pl.cdiv(n, 2))
    tb = int(min(tb_max, n))
    return tb, int(pl.cdiv(n, tb))


def multi_spectral_attention(x, fused_weight, w1, w2):
    n, c, h, w = x.shape
    hw = h * w
    hw_pad = ((hw + 127) // 128) * 128                  # lane-dense last axis
    x_flat = x.reshape(n, c, hw)
    wf = fused_weight.astype(jnp.float32)
    if hw_pad != hw:
        # Zero-pad both x and the fused weight: padded lanes contribute 0 to y,
        # and the padded output columns are sliced off below.
        x_flat = jnp.pad(x_flat, ((0, 0), (0, 0), (0, hw_pad - hw)))
        wf = jnp.pad(wf, ((0, 0), (0, hw_pad - hw)))

    vmem_cap = _vmem_capacity_bytes()
    vmem_limit = int(min(max(vmem_cap - (8 << 20), 32 << 20), 112 << 20))
    two_cores = vmem_cap <= (64 << 20)                  # v7x-class part: 2 TCs/chip
    elem = jnp.dtype(x.dtype).itemsize
    tb, grid_b = _pick_batch_tile(n, c, hw_pad, elem, vmem_limit, two_cores)
    # TODO(synk): if a single sample (C*HW) ever exceeds the VMEM budget, add
    # spatial/channel tiling with a two-pass reduce; not needed at these sizes.

    n_pad = tb * grid_b
    if n_pad != n:
        x_flat = jnp.pad(x_flat, ((0, n_pad - n), (0, 0), (0, 0)))

    out_flat = pl.pallas_call(
        msa_kernel,
        out_shape=jax.ShapeDtypeStruct((n_pad, c, hw_pad), x.dtype),
        grid_spec=pltpu.PrefetchScalarGridSpec(
            num_scalar_prefetch=0,
            grid=(grid_b,),
            in_specs=[
                pl.BlockSpec((tb, c, hw_pad), lambda b: (b, 0, 0)),   # x (TB samples)
                pl.BlockSpec((c, hw_pad), lambda b: (0, 0)),          # fused DCT weight
                pl.BlockSpec(w1.shape, lambda b: (0, 0)),             # FC1 (C, C//r)
                pl.BlockSpec(w2.shape, lambda b: (0, 0)),             # FC2 (C//r, C)
            ],
            out_specs=pl.BlockSpec((tb, c, hw_pad), lambda b: (b, 0, 0)),
        ),
        compiler_params=pltpu.CompilerParams(
            dimension_semantics=("parallel",),          # batch axis -> both TCs on v7x
            vmem_limit_bytes=vmem_limit,
        ),
    )(x_flat, wf, w1, w2)

    return out_flat[:n, :, :hw].reshape(n, c, h, w)


# ----------------------------------------------------------------------------
# Pure-JAX reference (direct transcription of the PyTorch forward)
# ----------------------------------------------------------------------------
def reference(x, dct_weight, w1, w2, dct_h, dct_w):
    n, c, h, w = x.shape
    Ph = jnp.asarray(adaptive_pool_matrix(dct_h, h))
    Pw = jnp.asarray(adaptive_pool_matrix(dct_w, w))
    x_pooled = jnp.einsum('ph,nchw,qw->ncpq', Ph, x, Pw)                 # adaptive pool
    y = jnp.sum(jnp.mean(x_pooled, axis=3) * dct_weight[None], axis=2)   # (N, C)
    z = jnp.maximum(y @ w1, 0.0)
    s = 1.0 / (1.0 + jnp.exp(-(z @ w2)))
    return x * s[:, :, None, None]


if __name__ == "__main__":
    key = jax.random.PRNGKey(0)
    k1, k2, kx1, kx2 = jax.random.split(key, 4)

    # ---- config A: channel=32, dct 16x16, reduction=16, top16 ---------------
    channel, dct_h, dct_w, reduction, method = 32, 16, 16, 16, "top16"
    hidden = channel // reduction
    mapper_x, mapper_y = get_freq_indices(method)
    mapper_x = [mx * (dct_h // 7) for mx in mapper_x]
    dct_weight = build_dct_filter(dct_h, mapper_x, channel)              # np (C, dct_h)
    # Deterministic synthetic FC weights (pre-transposed vs nn.Linear: y @ W)
    w1 = jax.random.normal(k1, (channel, hidden), jnp.float32) * 0.1     # Linear(C, C//r).weight.T
    w2 = jax.random.normal(k2, (hidden, channel), jnp.float32) * 0.1     # Linear(C//r, C).weight.T

    # case 1: H == dct_h, W == dct_w, f32 (16*16 = 256, already lane-aligned)
    x = jax.random.normal(kx1, (2, channel, 16, 16), jnp.float32)
    wfull = build_fused_weight(dct_weight, 16, 16, dct_h, dct_w)
    out = jax.block_until_ready(multi_spectral_attention(x, wfull, w1, w2))
    ref = reference(x, jnp.asarray(dct_weight), w1, w2, dct_h, dct_w)
    np.testing.assert_allclose(np.asarray(out), np.asarray(ref), rtol=1e-4, atol=1e-4)

    # case 2: bf16 at the HBM boundary (half the traffic; f32 reduce inside)
    x_bf = x.astype(jnp.bfloat16)
    out_bf = jax.block_until_ready(multi_spectral_attention(x_bf, wfull, w1, w2))
    ref_bf = reference(x_bf.astype(jnp.float32), jnp.asarray(dct_weight), w1, w2, dct_h, dct_w)
    np.testing.assert_allclose(np.asarray(out_bf).astype(np.float32),
                               np.asarray(ref_bf), rtol=5e-2, atol=5e-2)

    # ---- config B: dct 7x7, spatial 14x14 (hw=196, NOT lane-aligned), odd N --
    # Exercises the H*W lane-padding and the batch-padding (non-divisor) paths.
    dct_h2 = dct_w2 = 7
    mapper_x2, _ = get_freq_indices(method)
    mapper_x2 = [mx * (dct_h2 // 7) for mx in mapper_x2]
    dct_weight2 = build_dct_filter(dct_h2, mapper_x2, channel)
    x2 = jax.random.normal(kx2, (3, channel, 14, 14), jnp.float32)
    wfull2 = build_fused_weight(dct_weight2, 14, 14, dct_h2, dct_w2)
    out2 = jax.block_until_ready(multi_spectral_attention(x2, wfull2, w1, w2))
    ref2 = reference(x2, jnp.asarray(dct_weight2), w1, w2, dct_h2, dct_w2)
    np.testing.assert_allclose(np.asarray(out2), np.asarray(ref2), rtol=1e-4, atol=1e-4)

    print("KERNEL_OK")
</pallas_src>

<mosaic_0001>
module attributes {stable_mosaic.version = 11 : i64} {
  func.func @msa_kernel(%arg0: i32, %arg1: memref<1x32x256xf32, #tpu.memory_space<vmem>>, %arg2: memref<32x256xf32, #tpu.memory_space<vmem>>, %arg3: memref<32x2xf32, #tpu.memory_space<vmem>>, %arg4: memref<2x32xf32, #tpu.memory_space<vmem>>, %arg5: memref<1x32x256xf32, #tpu.memory_space<vmem>>) attributes {dimension_semantics = [#tpu.dimension_semantics<parallel>], iteration_bounds = array<i64: 2>, scalar_prefetch = 0 : i64, scratch_operands = 0 : i64, tpu.core_type = #tpu.core_type<tc>, window_params = [{transform_indices = @transform_0, window_bounds = array<i64: 1, 32, 256>}, {pipeline_mode = #tpu.pipeline_mode<synchronous>, transform_indices = @transform_1, window_bounds = array<i64: 32, 256>}, {pipeline_mode = #tpu.pipeline_mode<synchronous>, transform_indices = @transform_2, window_bounds = array<i64: 32, 2>}, {pipeline_mode = #tpu.pipeline_mode<synchronous>, transform_indices = @transform_3, window_bounds = array<i64: 2, 32>}, {transform_indices = @transform_4, window_bounds = array<i64: 1, 32, 256>}]} {
    %c0 = arith.constant 0 : index
    %c0_0 = arith.constant 0 : index
    %c0_1 = arith.constant 0 : index
    %0 = vector.load %arg1[%c0, %c0_0, %c0_1] : memref<1x32x256xf32, #tpu.memory_space<vmem>>, vector<1x32x256xf32>
    %c0_2 = arith.constant 0 : index
    %c0_3 = arith.constant 0 : index
    %1 = vector.load %arg2[%c0_2, %c0_3] : memref<32x256xf32, #tpu.memory_space<vmem>>, vector<32x256xf32>
    %2 = vector.shape_cast %1 : vector<32x256xf32> to vector<1x32x256xf32>
    %3 = arith.mulf %0, %2 : vector<1x32x256xf32>
    %cst = arith.constant dense<0.000000e+00> : vector<1x32xf32>
    %4 = vector.multi_reduction <add>, %3, %cst [2] : vector<1x32x256xf32> to vector<1x32xf32>
    %c0_4 = arith.constant 0 : index
    %c0_5 = arith.constant 0 : index
    %5 = vector.load %arg3[%c0_4, %c0_5] : memref<32x2xf32, #tpu.memory_space<vmem>>, vector<32x2xf32>
    %cst_6 = arith.constant dense<0.000000e+00> : vector<1x2xf32>
    %6 = tpu.matmul %4, %5, %cst_6 {dimension_numbers = #tpu.dot_dimension_numbers<[1], [0], [0], [1], [0, 0, 1, 1], [], []>} : vector<1x32xf32>, vector<32x2xf32>, vector<1x2xf32> -> vector<1x2xf32>
    %cst_7 = arith.constant 0.000000e+00 : f32
    %7 = vector.broadcast %cst_7 : f32 to vector<1x2xf32>
    %8 = arith.maximumf %6, %7 : vector<1x2xf32>
    %c0_8 = arith.constant 0 : index
    %c0_9 = arith.constant 0 : index
    %9 = vector.load %arg4[%c0_8, %c0_9] : memref<2x32xf32, #tpu.memory_space<vmem>>, vector<2x32xf32>
    %cst_10 = arith.constant dense<0.000000e+00> : vector<1x32xf32>
    %10 = tpu.matmul %8, %9, %cst_10 {dimension_numbers = #tpu.dot_dimension_numbers<[1], [0], [0], [1], [0, 0, 1, 1], [], []>} : vector<1x2xf32>, vector<2x32xf32>, vector<1x32xf32> -> vector<1x32xf32>
    %cst_11 = arith.constant 0.000000e+00 : f32
    %11 = vector.broadcast %cst_11 : f32 to vector<1x32xf32>
    %12 = arith.subf %11, %10 : vector<1x32xf32>
    %13 = math.exp %12 : vector<1x32xf32>
    %cst_12 = arith.constant 1.000000e+00 : f32
    %14 = vector.broadcast %cst_12 : f32 to vector<1x32xf32>
    %15 = arith.addf %14, %13 : vector<1x32xf32>
    %cst_13 = arith.constant 1.000000e+00 : f32
    %16 = vector.broadcast %cst_13 : f32 to vector<1x32xf32>
    %17 = arith.divf %16, %15 : vector<1x32xf32>
    %c0_14 = arith.constant 0 : index
    %c0_15 = arith.constant 0 : index
    %c0_16 = arith.constant 0 : index
    %18 = vector.load %arg1[%c0_14, %c0_15, %c0_16] : memref<1x32x256xf32, #tpu.memory_space<vmem>>, vector<1x32x256xf32>
    %19 = vector.shape_cast %17 : vector<1x32xf32> to vector<1x32x1xf32>
    %20 = vector.broadcast %19 : vector<1x32x1xf32> to vector<1x32x256xf32>
    %21 = arith.mulf %18, %20 : vector<1x32x256xf32>
    %c0_17 = arith.constant 0 : index
    %c0_18 = arith.constant 0 : index
    %c0_19 = arith.constant 0 : index
    %22 = vector.load %arg5[%c0_17, %c0_18, %c0_19] : memref<1x32x256xf32, #tpu.memory_space<vmem>>, vector<1x32x256xf32>
    tpu.vector_store %arg5[%c0_17, %c0_18, %c0_19], %21 {strides = array<i32>} : memref<1x32x256xf32, #tpu.memory_space<vmem>>, vector<1x32x256xf32>,
    return
  }
  func.func @transform_0(%arg0: i32) -> (i32, i32, i32) {
    %c0_i32 = arith.constant 0 : i32
    %c0_i32_0 = arith.constant 0 : i32
    %c0_i32_1 = arith.constant 0 : i32
    return %arg0, %c0_i32, %c0_i32_0 : i32, i32, i32
  }
  func.func @transform_1(%arg0: i32) -> (i32, i32) {
    %c0_i32 = arith.constant 0 : i32
    %c0_i32_0 = arith.constant 0 : i32
    %c0_i32_1 = arith.constant 0 : i32
    return %c0_i32, %c0_i32_0 : i32, i32
  }
  func.func @transform_2(%arg0: i32) -> (i32, i32) {
    %c0_i32 = arith.constant 0 : i32
    %c0_i32_0 = arith.constant 0 : i32
    %c0_i32_1 = arith.constant 0 : i32
    return %c0_i32, %c0_i32_0 : i32, i32
  }
  func.func @transform_3(%arg0: i32) -> (i32, i32) {
    %c0_i32 = arith.constant 0 : i32
    %c0_i32_0 = arith.constant 0 : i32
    %c0_i32_1 = arith.constant 0 : i32
    return %c0_i32, %c0_i32_0 : i32, i32
  }
  func.func @transform_4(%arg0: i32) -> (i32, i32, i32) {
    %c0_i32 = arith.constant 0 : i32
    %c0_i32_0 = arith.constant 0 : i32
    %c0_i32_1 = arith.constant 0 : i32
    return %arg0, %c0_i32, %c0_i32_0 : i32, i32, i32
  }
}

</mosaic_0001>

<bundles_post_ra>
// kernel: tpu_custom_call.1
= control target key start
LH: loop header
LB: loop body
LE: loop exit
PB: predicated region body
PF: predicated region fallthrough
CT: control target
= control target key end

     0   :  { %9 = vsyncpa [#allocation3], 0  ;;  %s954_s0 = inlined_call_operand.hbm [shape: f32[2,32,256], index: 0, kind: input, shape index: {}]   ;;  %s955_s1 = inlined_call_operand.hbm [shape: f32[32,256], index: 1, kind: input, shape index: {}]   ;;  %s956_s2 = inlined_call_operand.vmem [shape: f32[32,2], index: 2, kind: input, shape index: {}]   ;;  %s957_s3 = inlined_call_operand.vmem [shape: f32[2,32], index: 3, kind: input, shape index: {}]   ;;  %s958_s4 = inlined_call_operand.hbm [shape: f32[2,32,256], index: 4, kind: output, shape index: {}]  }
   0x1   :  { %11 = vsyncpa [#allocation3 + $0x1], 0 }
   0x2   :  { %12 = vsyncpa [#allocation6], 0 }
   0x3   :  { %13 = vsyncpa [#allocation4], 0 }
   0x4   :  { %15 = vsyncpa [#allocation4 + $0x1], 0  ;;  %s759_s15 = smov 0   ;;  %s761_s16 = smov 0  }
   0x5   :  { %s763_s17 = smov 0   ;;  %s765_s18 = smov 0  }
   0x6 LB: > { %s780_s19 = sadd.s32 4294967295, %s727_s18   ;;  %s506_s20 = sadd.s32 4294967294, %s727_s18   ;;  %s727_s18 = sphi %s765_s18, %s968_s18   ;;  %s723_s17 = sphi %s763_s17, %s967_s17   ;;  %s719_s16 = sphi %s761_s16, %s966_s16   ;;  %s715_s15 = sphi %s759_s15, %s965_s15  }
   0x7   : > { %p41_p0 = scmp.ne.s32.totalorder %s719_s16, %s715_s15  ;;  %p42_p1 = scmp.eq.s32.totalorder %s780_s19, 0 }
   0x8   : > { %p128_p2 = scmp.eq.s32.totalorder %s780_s19, 1  ;;  %p134_p3 = scmp.eq.s32.totalorder %s506_s20, 1 }
   0x9   : > { %p789_p4 = por %p42_p1, %p41_p0  ;;  %p507_p5 = scmp.ge.s32.totalorder %s727_s18, 1 }
   0xa   : > { %p794_p6 = por %p134_p3, %p41_p0  ;;  %p141_p7 = scmp.lt.s32.totalorder %s727_s18, 3 }
   0xb   : > { %s152_s25 = sshll.u32 %s955_s1, 4  ;;  %s729_s27 = smov [#allocation5]   ;;  %s153_s25 = int_to_ptr.hbm [resolvable:$true] %s152_s25 }
   0xc   : > { %p802_p8 = pnand %p507_p5, %p141_p7  ;;  %s154_s28 = sshll.u32 %s729_s27, 4  ;;  %s155_s28 = int_to_ptr.vmem [resolvable:$true] %s154_s28 }
   0xd   : > { %s812_s29 = sadd.s32 1, %s727_s18   ;;  %s730_s30 = smov 256  }
   0xe   : > { %p535_p9 = pneg %p802_p8  ;;  %s731_s5 = smov 16  }
   0xf   : > { %s25_s6 = ssub.s32 %s727_s18, %s812_s29  ;;  %s28_s7 = sadd.s32 1, %s723_s17 }
  0x10   : > { %p536_p10 = pnand %p535_p9, %p42_p1  ;;  %p26_p12 = scmp.eq.s32.totalorder %s25_s6, 0 }
  0x11   : > { %p35_p13 = scmp.ne.s32.totalorder %s723_s17, %s719_s16  ;;  %p36_p0 = scmp.eq.s32.totalorder %s727_s18, 0 }
  0x12   : > { %538 = dma.hbm_to_vmem [thread:$0]  (!%p536_p10), %s153_s25, 1024, %s155_s28, [#allocation6], %s730_s30, %s730_s30, %s731_s5  }
  0x13   : > { %s824_s8 = scalar_select %p26_p12, %s723_s17, %s28_s7  }
  0x14   : > { %p828_p3 = por %p128_p2, %p35_p13  ;;  %p548_p5 = scmp.lt.s32.totalorder %s727_s18, 2 }
  0x15   : > { %s174_s10 = sand.u32 1, %s723_s17   ;;  %s525_s11 = sshll.u32 %s727_s18, 6 }
  0x16   : > { %p37_p7 = por %p36_p0, %p35_p13  ;;  %s510_s12 = sshll.u32 %s174_s10, 6 }
  0x17   : > { %s183_s20 = scalar_lea.hbm %s954_s0, %s525_s11  ;;  %s178_s24 = scalar_lea.vmem [#allocation2], %s510_s12 }
  0x18   : > { %s184_s23 = sshll.u32 %s183_s20, 4  ;;  %s186_s25 = sshll.u32 %s178_s24, 4  ;;  %s185_s23 = int_to_ptr.hbm [resolvable:$true] %s184_s23  ;;  %s187_s25 = int_to_ptr.vmem [resolvable:$true] %s186_s25 }
  0x19   : > { %p838_p9 = pnand %p548_p5, %p37_p7  ;;  %s175_s28 = scalar_lea.sflag [#allocation3], %s174_s10 }
  0x1a   : > { %s627_s6 = sshra.s32 %s185_s23, 4  ;;  %s634_s12 = scalar_lea.hbm %s954_s0, 128  ;;  %s628_s6 = int_to_ptr.hbm [resolvable:$true] %s627_s6 }
  0x1b   : > { %s629_s7 = scalar_lea.hbm %s628_s6, 64  ;;  %p631_p10 = pneg %p838_p9 }
  0x1c   : > { %p630_p2 = scmp.ne.s32.totalorder %s628_s6, %s629_s7  ;;  %p635_p0 = scmp.lt.s32.totalorder %s628_s6, %s954_s0 }
  0x1d   : > { %p636_p5 = scmp.lt.s32.totalorder %s634_s12, %s629_s7 }
  0x1e   : > { %p632_p12 = pnand %p631_p10, %p630_p2 }
  0x1f   : > { %p637_p7 = por %p636_p5, %p635_p0 }
  0x20   : > { %p633_p13 = pneg %p632_p12 }
  0x22   : > { %p638_p11 = pnand %p637_p7, %p633_p13 }
  0x24   : > { %641 = shalt.err (!%p638_p11)
}
  0x25   : > { %542 = dma.hbm_to_vmem [thread:$0]  (!%p838_p9), %s185_s23, 1024, %s187_s25, %s175_s28, %s730_s30, %s730_s30, %s731_s5  }
  0x26   : > { %198 = sbr.rel (%p802_p8) target bundleno = 591 (0x24f), region = 36  ;;  %s858_s10 = sand.u32 (!%p802_p8), 1, %s719_s16  }
  0x27   : > { %s514_s24 = sshll.u32 (!%p802_p8), %s858_s10, 6  ;;  %s201_s6 = scalar_lea.sflag (!%p802_p8), [#allocation3], %s858_s10 }
  0x28   : > { %s204_s7 = scalar_lea.vmem (!%p802_p8), [#allocation2], %s514_s24 }
  0x2b   : > { %702 = dma.done.wait (%p789_p4), %s201_s6, 1024  }
  0x2c   : > { %704 = vsyncadd (%p789_p4), %s201_s6, 4294966272 }
  0x2d   : > { %706 = dma.done.wait (%p42_p1), [#allocation6], 1024  }
  0x2e   : > { %708 = vsyncadd (%p42_p1), [#allocation6], 4294966272  ;;  %v872_v0 = vld [vmem:[%s204_s7] sm:$0xff]  ;;  %v874_v1 = vld [vmem:[%s204_s7 + $0x8] sm:$0xff]  ;;  %v279_v32 = vlaneseq  ;;  %vm284_vm0 = vcmask 130112   ;;  %vm288_vm1 = vcmask 195712  }
  0x2f   : > { %v243_v2 = vld [vmem:[#allocation5] sm:$0xff]  ;;  %v244_v3 = vld [vmem:[#allocation5 + $0x8] sm:$0xff]  ;;  %v882_v10 = vld [vmem:[%s204_s7 + $0x10] sm:$0xff]  ;;  %vm292_vm2 = vcmask 261312   ;;  %vm294_vm3 = vcmask 261120   ;;  %vm323_vm4 = vcmask 1041408  }
  0x30   : > { %v251_v4 = vmul.f32 %v243_v2, %v872_v0  ;;  %v877_v5 = vld [vmem:[%s204_s7 + $0x20] sm:$0xff]  ;;  %v879_v6 = vld [vmem:[%s204_s7 + $0x28] sm:$0xff]  ;;  %v252_v7 = vmul.f32 %v244_v3, %v874_v1  ;;  %v886_v13 = vld [vmem:[%s204_s7 + $0x18] sm:$0xff]  ;;  %v280_v35 = vand.u32 127, %v279_v32  ;;  %vm319_vm5 = vcmask 15360   ;;  %s234_s12 = scalar_lea.vmem [#allocation7], %s514_s24 }
  0x31   : > { %v247_v8 = vld [vmem:[#allocation5 + $0x20] sm:$0xff]  ;;  %v248_v9 = vld [vmem:[#allocation5 + $0x28] sm:$0xff]  ;;  %v245_v14 = vld [vmem:[#allocation5 + $0x10] sm:$0xff]  ;;  %v368_v51 = vshrl.u32 %v279_v32, 7  ;;  %s526_s14 = sshll.u32 %s780_s19, 6  ;;  %s420_s21 = sshll.u32 %s234_s12, 4  ;;  %s421_s21 = int_to_ptr.vmem [resolvable:$true] %s420_s21 }
  0x32   : > { %v255_v11 = vmul.f32 %v247_v8, %v877_v5  ;;  %v256_v12 = vmul.f32 %v248_v9, %v879_v6  ;;  %v246_v15 = vld [vmem:[#allocation5 + $0x18] sm:$0xff]  ;;  %v259_v16 = vadd.f32 %v252_v7, %v251_v4  ;;  %v888_v17 = vld [vmem:[%s204_s7 + $0x30] sm:$0xff]  ;;  %v253_v22 = vmul.f32 %v245_v14, %v882_v10  ;;  %v272_v30 = vld [vmem:[%s956_s2 + $0x8] sm:$0xff]  ;;  %s408_s19 = scalar_lea.sflag [#allocation4], %s858_s10  ;;  %s677_s25 = scalar_lea.hbm %s958_s4, 128 }
  0x33   : > { %v890_v18 = vld [vmem:[%s204_s7 + $0x38] sm:$0xff]  ;;  %v249_v19 = vld [vmem:[#allocation5 + $0x30] sm:$0xff]  ;;  %v254_v23 = vmul.f32 %v246_v15, %v886_v13  ;;  %v271_v31 = vld [vmem:[%s956_s2] sm:$0xff]  ;;  %v282_v36 = vadd.s32 4294967288, %v280_v35  ;;  %v286_v37 = vadd.s32 4294967280, %v280_v35  ;;  %v290_v38 = vadd.s32 4294967272, %v280_v35  ;;  %588 = vset.pattern.permute.xlu2 %v368_v51  ;;  %s419_s7 = scalar_lea.hbm %s958_s4, %s526_s14 }
  0x34   : > { %v265_v20 = vadd.f32 %v256_v12, %v255_v11  ;;  %v250_v21 = vld [vmem:[#allocation5 + $0x38] sm:$0xff]  ;;  %260 = vadd.xlane.f32.xlu0 %v259_v16  ;;  %v257_v24 = vmul.f32 %v249_v19, %v888_v17  ;;  %v273_v29 = vld [vmem:[%s956_s2 + $0x10] sm:$0xff]  ;;  %v318_v48 = vld [vmem:[%s957_s3] sm:$0x3]  ;;  %v387_v52 = vadd.s32 24, %v368_v51  ;;  %v381_v53 = vadd.s32 16, %v368_v51 }
  0x35   : > { %v258_v25 = vmul.f32 %v250_v21, %v890_v18  ;;  %v262_v26 = vadd.f32 %v254_v23, %v253_v22  ;;  %v274_v28 = vld [vmem:[%s956_s2 + $0x18] sm:$0xff]  ;;  %518 = vmatpush.msk.msra.mxu1 %vm323_vm4, %v318_v48  ;;  %v375_v11 = vadd.s32 8, %v368_v51  ;;  %s422_s26 = sshll.u32 %s419_s7, 4  ;;  %s423_s26 = int_to_ptr.hbm [resolvable:$true] %s422_s26 }
  0x36   : > { %266 = vadd.xlane.f32.xlu1 %v265_v20  ;;  %309 = vmatpush.msra.mxu0 %v274_v28  ;;  %s671_s24 = sshra.s32 %s423_s26, 4  ;;  %s672_s24 = int_to_ptr.hbm [resolvable:$true] %s671_s24 }
  0x37   : > { %v268_v27 = vadd.f32 %v258_v25, %v257_v24  ;;  %591 = vset.pattern.permute.xlu1 %v387_v52  ;;  %590 = vset.pattern.permute.xlu0 %v381_v53  ;;  %s673_s30 = scalar_lea.hbm %s672_s24, 64  ;;  %p678_p11 = scmp.lt.s32.totalorder %s672_s24, %s958_s4 }
  0x38   : > { %310 = vmatpush.msra.mxu0 %v273_v29  ;;  %p674_p1 = scmp.ne.s32.totalorder %s672_s24, %s673_s30  ;;  %p679_p9 = scmp.lt.s32.totalorder %s677_s25, %s673_s30 }
  0x3a   : > { %311 = vmatpush.msra.mxu0 %v272_v30  ;;  %p675_p4 = pnand %p674_p1, %p828_p3  ;;  %p680_p2 = por %p679_p9, %p678_p11 }
  0x3c   : > { %263 = vadd.xlane.f32.xlu0 %v262_v26  ;;  %312 = vmatpush.msra.mxu0 %v271_v31  ;;  %p676_p8 = pneg %p675_p4 }
  0x3e   : > { %269 = vadd.xlane.f32.xlu1 %v268_v27  ;;  %p681_p10 = pnand %p680_p2, %p676_p8 }
  0xa7   : > { %v261_v33 = vpop.xlane.xlu0 %260 }
  0xa8   : > { %v281_v40 = vperm.slane %v261_v33, %v280_v35 }
  0xa9   : > { %v267_v34 = vpop.xlane.xlu1 %266 }
  0xaa   : > { %v287_v43 = vperm.slane %v267_v34, %v286_v37 }
  0xaf   : > { %v264_v39 = vpop.xlane.xlu0 %263 }
  0xb0   : > { %v283_v41 = vperm.slane %v264_v39, %v282_v36 }
  0xb1   : > { %v270_v42 = vpop.xlane.xlu1 %269 }
  0xb2   : > { %v291_v44 = vperm.slane %v270_v42, %v290_v38  ;;  %v285_v45 = vsel %vm284_vm0, %v283_v41, %v281_v40 }
  0xb3   : > { %v289_v46 = vsel %vm288_vm1, %v287_v43, %v285_v45 }
  0xb4   : > { %v293_v47 = vsel %vm292_vm2, %v291_v44, %v289_v46 }
  0xb5   : > { %517 = vmatmul.msk.f32.vlgmr.msra.gmra.mxu0 %vm294_vm3, %v293_v47 }
 0x132   : > { %v314_v49 = vpop.f32.mrf.mxu0 }
 0x133   : > { %v317_v50 = vmax.f32 %v314_v49, 0.0 }
 0x135   : > { %519 = vmatmul.msk.f32.vlgmr.msra.gmra.mxu1 %vm319_vm5, %v317_v50 }
 0x1b2   : > { %v344_v54 = vpop.f32.mrf.mxu1 }
 0x1b3   : > { %v347_v55 = vsub.f32 0.0, %v344_v54 }
 0x1b5   : > { %v348_v56 = vmul.f32 1.442695, %v347_v55 }
 0x1b7   : > { %593 = vpow2.f32 %v348_v56 }
 0x1bd   : > { %v594_v57 = vpop.eup %593 }
 0x1be   : > { %v350_v58 = vadd.f32 1.0, %v594_v57 }
 0x1c0   : > { %595 = vrcp.f32 %v350_v58  ;;  %v362_v62 = vand.u32 2147483648, %v350_v58  ;;  %v360_v2 = vand.u32 2147483647, %v350_v58  ;;  %vm356_vm7 = vweird.f32 %v350_v58 }
 0x1c2   : > { %v363_v4 = vor.u32 1.1754944e-38, %v362_v62  ;;  %vm361_vm9 = vcmp.eq.f32.partialorder %v360_v2, 8.507059e+37 }
 0x1c6   : > { %v596_v59 = vpop.eup %595 }
 0x1c7   : > { %v352_v60 = vmul.f32 %v596_v59, %v350_v58  ;;  %vm357_vm6 = vweird.f32 %v596_v59 }
 0x1c8   : > { %vm358_vm8 = vmor %vm356_vm7, %vm357_vm6 }
 0x1c9   : > { %v353_v61 = vsub.f32 1.0, %v352_v60 }
 0x1cb   : > { %v354_v63 = vmul.f32 %v596_v59, %v353_v61 }
 0x1cd   : > { %v355_v3 = vadd.f32 %v596_v59, %v354_v63 }
 0x1cf   : > { %v359_v7 = vsel %vm358_vm8, %v596_v59, %v355_v3 }
 0x1d0   : > { %v364_v8 = vsel %vm361_vm9, %v363_v4, %v359_v7 }
 0x1d1   : > { %v366_v9 = vperm.slane %v364_v8, 0 }
 0x1d3   : > { %389 = vperm.xlu1 %591, %v366_v9   ;;  %383 = vperm.xlu0 %590, %v366_v9  }
 0x1d4   : > { %371 = vperm.xlu2 %588, %v366_v9  }
 0x1db   : > { %592 = vset.pattern.permute.xlu0 %v387_v52 }
 0x1dc   : > { %589 = vset.pattern.permute.xlu2 %v375_v11 }
 0x1e4   : > { %377 = vperm.xlu2 %589, %v366_v9  }
 0x22e   : > { %v372_v12 = vpop.permute.xlu2 %371 }
 0x22f   : > { %v391_v14 = vmul.f32 %v372_v12, %v872_v0  ;;  %v392_v15 = vmul.f32 %v372_v12, %v874_v1 }
 0x231   : > { %399 = vst [vmem:[%s234_s12] sm:$0xff] %v391_v14 }
 0x232   : > { %400 = vst [vmem:[%s234_s12 + $0x8] sm:$0xff] %v392_v15 }
 0x23e   : > { %v378_v16 = vpop.permute.xlu2 %377 }
 0x23f   : > { %v393_v19 = vmul.f32 %v378_v16, %v882_v10  ;;  %v394_v20 = vmul.f32 %v378_v16, %v886_v13 }
 0x241   : > { %401 = vst [vmem:[%s234_s12 + $0x10] sm:$0xff] %v393_v19 }
 0x242   : > { %402 = vst [vmem:[%s234_s12 + $0x18] sm:$0xff] %v394_v20 }
 0x245   : > { %v390_v0 = vpop.permute.xlu1 %389  ;;  %v384_v1 = vpop.permute.xlu0 %383 }
 0x246   : > { %v397_v21 = vmul.f32 %v390_v0, %v888_v17  ;;  %v398_v22 = vmul.f32 %v390_v0, %v890_v18  ;;  %v395_v10 = vmul.f32 %v384_v1, %v877_v5  ;;  %v396_v13 = vmul.f32 %v384_v1, %v879_v6 }
 0x248   : > { %405 = vst [vmem:[%s234_s12 + $0x30] sm:$0xff] %v397_v21 }
 0x249   : > { %406 = vst [vmem:[%s234_s12 + $0x38] sm:$0xff] %v398_v22 }
 0x24a   : > { %403 = vst [vmem:[%s234_s12 + $0x20] sm:$0xff] %v395_v10 }
 0x24b   : > { %404 = vst [vmem:[%s234_s12 + $0x28] sm:$0xff] %v396_v13 }
 0x24c   : > { %684 = shalt.err (!%p681_p10)
}
 0x24d   : > { %s732_s10 = smov 256   ;;  %s733_s11 = smov 16  }
 0x24e   : > { %533 = dma.vmem_to_hbm [thread:$0]  (%p828_p3), %s421_s21, 1024, %s423_s26, %s408_s19, %s732_s10, %s732_s10, %s733_s11  }
 0x24f PF: > { %s437_s13 = sand.u32 1, %s715_s15   ;;  %p964_p12 = scmp.ge.s32.totalorder %s727_s18, 2 }
 0x250   : > { %s438_s12 = scalar_lea.sflag [#allocation4], %s437_s13 }
 0x251   : > { %p544_p13 = pnand %p964_p12, %p794_p6 }
 0x253   : > { %p545_p0 = pneg %p544_p13 }
 0x255   : > { %710 = dma.done.wait (%p545_p0), %s438_s12, 1024  }
 0x256   : > { %712 = vsyncadd (%p545_p0), %s438_s12, 4294966272  ;;  %p18_p5 = scmp.ge.s32.totalorder %s812_s29, 4   ;;  %s965_s15 = smov %s719_s16 }
 0x257   : > { %s966_s16 = smov %s723_s17  ;;  %s967_s17 = smov %s824_s8 }
 0x258   : > { %s968_s18 = smov %s812_s29  ;;  %20 = sbr.rel (!%p18_p5) target bundleno = 6 (0x6), region = 85 }
 0x25d   :  { %444 = vsyncpa [#allocation3], 1 }
 0x25e   :  { %446 = vsyncpa [#allocation3 + $0x1], 1 }
 0x25f   :  { %447 = vsyncpa [#allocation6], 1 }
 0x260   :  { %448 = vsyncpa [#allocation4], 1 }
 0x261   :  { %450 = vsyncpa [#allocation4 + $0x1], 1 }

</bundles_post_ra>
